<compile_context>
chip_gen: v5e
topology: v5e:2x2
jax: 0.10.0
libtpu: 0.0.40
codegen_flags: <defaults>
</compile_context>

<pallas_src>
import functools

import jax
import jax.numpy as jnp
from jax.experimental import pallas as pl
from jax.experimental.pallas import tpu as pltpu

H1, H2, OUT = 16, 8, 2
OUT_PAD = 8  # pad final layer to 8 rows for dense (8, TB) stores


def mlp_kernel(xT_ref, w1_ref, w2_ref, w3_ref, b_ref, oT_ref):
    # xT_ref: (input_size, TB) bf16   -- batch on lanes
    # w1_ref: (16, input_size) bf16
    # w2_ref: (8, 16)          bf16
    # w3_ref: (8, 8)           bf16 (rows 2..7 are zero padding)
    # b_ref : (32, 1)          f32   -- [b1(16) | b2(8) | b3 padded to 8]
    # oT_ref: (8, TB)          f32
    xT = xT_ref[...]
    b1 = b_ref[0:H1, :]
    b2 = b_ref[H1:H1 + H2, :]
    b3 = b_ref[H1 + H2:H1 + H2 + OUT_PAD, :]

    # fc1: bf16 x bf16 on the MXU, f32 accumulate; bias/ReLU in f32.
    h1 = jnp.dot(w1_ref[...], xT, preferred_element_type=jnp.float32) + b1
    h1 = jnp.maximum(h1, 0.0)                                   # (16, TB) f32

    # fc2 / fc3: tiny weights, upcast to f32 in-kernel (free) so the
    # elementwise path stays f32 on all chips.
    h2 = jnp.dot(w2_ref[...].astype(jnp.float32), h1,
                 preferred_element_type=jnp.float32) + b2
    h2 = jnp.maximum(h2, 0.0)                                   # (8, TB) f32

    o = jnp.dot(w3_ref[...].astype(jnp.float32), h2,
                preferred_element_type=jnp.float32) + b3        # (8, TB) f32
    oT_ref[...] = o.astype(oT_ref.dtype)


@functools.partial(jax.jit, static_argnames=("block_b",))
def simple_nn_forward(x, params, *, block_b=1024):
    """x: (B, input_size) f32. params: PyTorch-convention weights (out, in), biases (out,)."""
    B, in_dim = x.shape
    w1, b1 = params["w1"], params["b1"]
    w2, b2 = params["w2"], params["b2"]
    w3, b3 = params["w3"], params["b3"]

    # --- batch tiling: lane axis must be a multiple of 128 ---------------------
    b_pad = pl.cdiv(B, 128) * 128
    tb = min(block_b, b_pad)               # block_b is a multiple of 128
    b_pad = pl.cdiv(b_pad, tb) * tb
    n_blocks = b_pad // tb

    # --- wrapper-side layout plumbing (transpose / pad / dtype casts) ---------
    xT = jnp.pad(x, ((0, b_pad - B), (0, 0))).T.astype(jnp.bfloat16)   # (in, Bp)
    w1k = w1.astype(jnp.bfloat16)                                      # (16, in)
    w2k = w2.astype(jnp.bfloat16)                                      # (8, 16)
    w3k = jnp.pad(w3, ((0, OUT_PAD - OUT), (0, 0))).astype(jnp.bfloat16)  # (8, 8)
    b_all = jnp.concatenate(
        [b1, b2, jnp.pad(b3, (0, OUT_PAD - OUT))]
    ).astype(jnp.float32).reshape(H1 + H2 + OUT_PAD, 1)                # (32, 1)

    flops = 2 * B * (in_dim * H1 + H1 * H2 + H2 * OUT)
    bytes_accessed = (xT.size * 2 + w1k.size * 2 + w2k.size * 2 + w3k.size * 2
                      + b_all.size * 4 + OUT_PAD * b_pad * 4)

    out_T = pl.pallas_call(
        mlp_kernel,
        out_shape=jax.ShapeDtypeStruct((OUT_PAD, b_pad), jnp.float32),
        grid=(n_blocks,),
        in_specs=[
            pl.BlockSpec((in_dim, tb), lambda i: (0, i)),   # x: tiled over batch
            pl.BlockSpec(w1k.shape, lambda i: (0, 0)),      # weights resident
            pl.BlockSpec(w2k.shape, lambda i: (0, 0)),
            pl.BlockSpec(w3k.shape, lambda i: (0, 0)),
            pl.BlockSpec(b_all.shape, lambda i: (0, 0)),
        ],
        out_specs=pl.BlockSpec((OUT_PAD, tb), lambda i: (0, i)),
        compiler_params=pltpu.CompilerParams(
            dimension_semantics=("parallel",)),
        cost_estimate=pl.CostEstimate(flops=flops, transcendentals=0,
                                      bytes_accessed=bytes_accessed),
    )(xT, w1k, w2k, w3k, b_all)

    # (8, Bp) -> (B, 2)
    return out_T[:OUT, :B].T


def init_params(key, input_size):
    """Deterministic init mirroring nn.Linear's U(-1/sqrt(in), 1/sqrt(in)); PyTorch (out,in) layout."""
    dims = [(input_size, H1), (H1, H2), (H2, OUT)]
    params = {}
    for idx, (fan_in, fan_out) in enumerate(dims, start=1):
        key, kw, kb = jax.random.split(key, 3)
        bound = 1.0 / jnp.sqrt(jnp.float32(fan_in))
        params[f"w{idx}"] = jax.random.uniform(
            kw, (fan_out, fan_in), jnp.float32, -bound, bound)
        params[f"b{idx}"] = jax.random.uniform(
            kb, (fan_out,), jnp.float32, -bound, bound)
    return params


def reference_forward(x, p):
    """Pure-JAX reference with the same bf16 quantization of x / weights."""
    q = lambda a: a.astype(jnp.bfloat16).astype(jnp.float32)
    xq = q(x)
    h1 = jnp.maximum(xq @ q(p["w1"]).T + p["b1"], 0.0)
    h2 = jnp.maximum(h1 @ q(p["w2"]).T + p["b2"], 0.0)
    return h2 @ q(p["w3"]).T + p["b3"]


if __name__ == "__main__":
    key = jax.random.PRNGKey(0)
    batch, input_size = 512, 32

    key, kx = jax.random.split(key)
    x = jax.random.normal(kx, (batch, input_size), jnp.float32)
    params = init_params(key, input_size)

    # block_b=256 -> 2 grid steps over the batch (weights stay resident in VMEM).
    out = simple_nn_forward(x, params, block_b=256)
    out = jax.block_until_ready(out)

    ref = reference_forward(x, params)
    assert out.shape == (batch, OUT)
    assert jnp.allclose(out, ref, atol=1e-4, rtol=1e-4)

    print("KERNEL_OK")
</pallas_src>

<mosaic_0001>
module attributes {stable_mosaic.version = 11 : i64} {
  func.func @mlp_kernel(%arg0: i32, %arg1: memref<32x256xbf16, #tpu.memory_space<vmem>>, %arg2: memref<16x32xbf16, #tpu.memory_space<vmem>>, %arg3: memref<8x16xbf16, #tpu.memory_space<vmem>>, %arg4: memref<8x8xbf16, #tpu.memory_space<vmem>>, %arg5: memref<32x1xf32, #tpu.memory_space<vmem>>, %arg6: memref<8x256xf32, #tpu.memory_space<vmem>>) attributes {dimension_semantics = [#tpu.dimension_semantics<parallel>], iteration_bounds = array<i64: 2>, scalar_prefetch = 0 : i64, scratch_operands = 0 : i64, tpu.core_type = #tpu.core_type<tc>, window_params = [{transform_indices = @transform_0, window_bounds = array<i64: 32, 256>}, {pipeline_mode = #tpu.pipeline_mode<synchronous>, transform_indices = @transform_1, window_bounds = array<i64: 16, 32>}, {pipeline_mode = #tpu.pipeline_mode<synchronous>, transform_indices = @transform_2, window_bounds = array<i64: 8, 16>}, {pipeline_mode = #tpu.pipeline_mode<synchronous>, transform_indices = @transform_3, window_bounds = array<i64: 8, 8>}, {pipeline_mode = #tpu.pipeline_mode<synchronous>, transform_indices = @transform_4, window_bounds = array<i64: 32, 1>}, {transform_indices = @transform_5, window_bounds = array<i64: 8, 256>}]} {
    %c0 = arith.constant 0 : index
    %c0_0 = arith.constant 0 : index
    %0 = vector.load %arg1[%c0, %c0_0] : memref<32x256xbf16, #tpu.memory_space<vmem>>, vector<32x256xbf16>
    %c0_1 = arith.constant 0 : index
    %c0_2 = arith.constant 0 : index
    %1 = vector.load %arg5[%c0_1, %c0_2] : memref<32x1xf32, #tpu.memory_space<vmem>>, vector<16x1xf32>
    %c16 = arith.constant 16 : index
    %c0_3 = arith.constant 0 : index
    %2 = vector.load %arg5[%c16, %c0_3] : memref<32x1xf32, #tpu.memory_space<vmem>>, vector<8x1xf32>
    %c24 = arith.constant 24 : index
    %c0_4 = arith.constant 0 : index
    %3 = vector.load %arg5[%c24, %c0_4] : memref<32x1xf32, #tpu.memory_space<vmem>>, vector<8x1xf32>
    %c0_5 = arith.constant 0 : index
    %c0_6 = arith.constant 0 : index
    %4 = vector.load %arg2[%c0_5, %c0_6] : memref<16x32xbf16, #tpu.memory_space<vmem>>, vector<16x32xbf16>
    %cst = arith.constant dense<0.000000e+00> : vector<16x256xf32>
    %5 = tpu.matmul %4, %0, %cst {dimension_numbers = #tpu.dot_dimension_numbers<[1], [0], [0], [1], [0, 0, 1, 1], [], []>} : vector<16x32xbf16>, vector<32x256xbf16>, vector<16x256xf32> -> vector<16x256xf32>
    %6 = vector.broadcast %1 : vector<16x1xf32> to vector<16x256xf32>
    %7 = arith.addf %5, %6 : vector<16x256xf32>
    %cst_7 = arith.constant 0.000000e+00 : f32
    %8 = vector.broadcast %cst_7 : f32 to vector<16x256xf32>
    %9 = arith.maximumf %7, %8 : vector<16x256xf32>
    %c0_8 = arith.constant 0 : index
    %c0_9 = arith.constant 0 : index
    %10 = vector.load %arg3[%c0_8, %c0_9] : memref<8x16xbf16, #tpu.memory_space<vmem>>, vector<8x16xbf16>
    %11 = arith.extf %10 : vector<8x16xbf16> to vector<8x16xf32>
    %cst_10 = arith.constant dense<0.000000e+00> : vector<8x256xf32>
    %12 = tpu.matmul %11, %9, %cst_10 {dimension_numbers = #tpu.dot_dimension_numbers<[1], [0], [0], [1], [0, 0, 1, 1], [], []>} : vector<8x16xf32>, vector<16x256xf32>, vector<8x256xf32> -> vector<8x256xf32>
    %13 = vector.broadcast %2 : vector<8x1xf32> to vector<8x256xf32>
    %14 = arith.addf %12, %13 : vector<8x256xf32>
    %cst_11 = arith.constant 0.000000e+00 : f32
    %15 = vector.broadcast %cst_11 : f32 to vector<8x256xf32>
    %16 = arith.maximumf %14, %15 : vector<8x256xf32>
    %c0_12 = arith.constant 0 : index
    %c0_13 = arith.constant 0 : index
    %17 = vector.load %arg4[%c0_12, %c0_13] : memref<8x8xbf16, #tpu.memory_space<vmem>>, vector<8x8xbf16>
    %18 = arith.extf %17 : vector<8x8xbf16> to vector<8x8xf32>
    %cst_14 = arith.constant dense<0.000000e+00> : vector<8x256xf32>
    %19 = tpu.matmul %18, %16, %cst_14 {dimension_numbers = #tpu.dot_dimension_numbers<[1], [0], [0], [1], [0, 0, 1, 1], [], []>} : vector<8x8xf32>, vector<8x256xf32>, vector<8x256xf32> -> vector<8x256xf32>
    %20 = vector.broadcast %3 : vector<8x1xf32> to vector<8x256xf32>
    %21 = arith.addf %19, %20 : vector<8x256xf32>
    %c0_15 = arith.constant 0 : index
    %c0_16 = arith.constant 0 : index
    %22 = vector.load %arg6[%c0_15, %c0_16] : memref<8x256xf32, #tpu.memory_space<vmem>>, vector<8x256xf32>
    tpu.vector_store %arg6[%c0_15, %c0_16], %21 {strides = array<i32>} : memref<8x256xf32, #tpu.memory_space<vmem>>, vector<8x256xf32>,
    return
  }
  func.func @transform_0(%arg0: i32) -> (i32, i32) {
    %c0_i32 = arith.constant 0 : i32
    %c0_i32_0 = arith.constant 0 : i32
    return %c0_i32, %arg0 : i32, i32
  }
  func.func @transform_1(%arg0: i32) -> (i32, i32) {
    %c0_i32 = arith.constant 0 : i32
    %c0_i32_0 = arith.constant 0 : i32
    %c0_i32_1 = arith.constant 0 : i32
    return %c0_i32, %c0_i32_0 : i32, i32
  }
  func.func @transform_2(%arg0: i32) -> (i32, i32) {
    %c0_i32 = arith.constant 0 : i32
    %c0_i32_0 = arith.constant 0 : i32
    %c0_i32_1 = arith.constant 0 : i32
    return %c0_i32, %c0_i32_0 : i32, i32
  }
  func.func @transform_3(%arg0: i32) -> (i32, i32) {
    %c0_i32 = arith.constant 0 : i32
    %c0_i32_0 = arith.constant 0 : i32
    %c0_i32_1 = arith.constant 0 : i32
    return %c0_i32, %c0_i32_0 : i32, i32
  }
  func.func @transform_4(%arg0: i32) -> (i32, i32) {
    %c0_i32 = arith.constant 0 : i32
    %c0_i32_0 = arith.constant 0 : i32
    %c0_i32_1 = arith.constant 0 : i32
    return %c0_i32, %c0_i32_0 : i32, i32
  }
  func.func @transform_5(%arg0: i32) -> (i32, i32) {
    %c0_i32 = arith.constant 0 : i32
    %c0_i32_0 = arith.constant 0 : i32
    return %c0_i32, %arg0 : i32, i32
  }
}

</mosaic_0001>

<bundles_post_ra>
// kernel: simple_nn_forward.1
= control target key start
LH: loop header
LB: loop body
LE: loop exit
PB: predicated region body
PF: predicated region fallthrough
CT: control target
= control target key end

     0   :  { %s652_s18 = smov 0   ;;  %s654_s19 = smov 0   ;;  %s725_s0 = inlined_call_operand.vmem [shape: bf16[32,512], index: 0, kind: input, shape index: {}]   ;;  %s726_s1 = inlined_call_operand.vmem [shape: bf16[16,32], index: 1, kind: input, shape index: {}]   ;;  %s727_s2 = inlined_call_operand.vmem [shape: bf16[8,16], index: 2, kind: input, shape index: {}]   ;;  %s728_s3 = inlined_call_operand.vmem [shape: bf16[8,8], index: 3, kind: input, shape index: {}]   ;;  %s729_s4 = inlined_call_operand.vmem [shape: f32[32,1], index: 4, kind: input, shape index: {}]   ;;  %s730_s5 = inlined_call_operand.vmem [shape: f32[8,512], index: 5, kind: output, shape index: {}]  }
   0x1   :  { %s656_s20 = smov 0  }
   0x2 LB: > { %s525_s21 = sadd.s32 4294967295, %s619_s20   ;;  %s669_s22 = sadd.s32 1, %s619_s20   ;;  %s619_s20 = sphi %s656_s20, %s733_s20   ;;  %s615_s19 = sphi %s654_s19, %s732_s19   ;;  %s611_s18 = sphi %s652_s18, %s731_s18  }
   0x3   : > { %s19_s23 = ssub.s32 %s619_s20, %s669_s22  ;;  %s22_s24 = sadd.s32 1, %s615_s19 }
   0x4   : > { %p20_p0 = scmp.eq.s32.totalorder %s19_s23, 0  ;;  %p29_p1 = scmp.ne.s32.totalorder %s615_s19, %s611_s18 }
   0x5   : > { %p30_p2 = scmp.eq.s32.totalorder %s619_s20, 0  ;;  %p528_p4 = scmp.ge.s32.totalorder %s619_s20, 2 }
   0x6   : > { %s678_s25 = scalar_select %p20_p0, %s615_s19, %s22_s24  }
   0x7   : > { %p31_p3 = por %p30_p2, %p29_p1  ;;  %177 = sbr.rel (%p528_p4) target bundleno = 20 (0x14), region = 32 }
   0xc   : > { %180 = sbr.rel (!%p31_p3) target bundleno = 20 (0x14), region = 36  ;;  %s182_s26 = sand.u32 (%p31_p3), 1, %s615_s19  }
   0xd   : > { %s564_s27 = sshll.u32 (%p31_p3), %s619_s20, 3  ;;  %s529_s28 = sshll.u32 (%p31_p3), %s182_s26, 5 }
   0xe   : > { %s187_s6 = scalar_lea.vmem (%p31_p3), %s725_s0, %s564_s27  ;;  %s184_s7 = scalar_lea.vmem (%p31_p3), [#allocation2], %s529_s28 }
   0xf   : > { %v222_v0 = vld [vmem:[%s187_s6] sm:$0xff] (%p31_p3)  ;;  %v224_v1 = vld [vmem:[%s187_s6 + $0x10] sm:$0xff] (%p31_p3) }
  0x10   : > { %v226_v2 = vld [vmem:[%s187_s6 + $0x20] sm:$0xff] (%p31_p3)  ;;  %223 = vst [vmem:[%s184_s7] sm:$0xff] (%p31_p3), %v222_v0  ;;  %v228_v3 = vld [vmem:[%s187_s6 + $0x30] sm:$0xff] (%p31_p3) }
  0x11   : > { %225 = vst [vmem:[%s184_s7 + $0x8] sm:$0xff] %v224_v1 }
  0x12   : > { %227 = vst [vmem:[%s184_s7 + $0x10] sm:$0xff] %v226_v2 }
  0x13   : > { %229 = vst [vmem:[%s184_s7 + $0x18] sm:$0xff] %v228_v3 }
  0x14 PF: > { %p532_p5 = scmp.ge.s32.totalorder %s619_s20, 1  ;;  %p234_p6 = scmp.lt.s32.totalorder %s619_s20, 3 }
  0x16   : > { %p235_p7 = pnand %p532_p5, %p234_p6 }
  0x17   : > { %s241_s8 = sand.u32 (!%p235_p7), 1, %s611_s18   ;;  %s534_s30 = sshll.u32 (!%p235_p7), %s525_s21, 1 }
  0x18   : > { %238 = sbr.rel (%p235_p7) target bundleno = 453 (0x1c5), region = 74  ;;  %s533_s11 = sshll.u32 (!%p235_p7), %s241_s8, 5 }
  0x19   : > { %s243_s12 = scalar_lea.vmem (!%p235_p7), [#allocation2], %s533_s11  ;;  %p270_p8 = scmp.lt.s32.totalorder (!%p235_p7), %s534_s30, 3 }
  0x1d   : > { %v281_v4 = vld [vmem:[%s729_s4 + $0x8] sm:$0xff]  ;;  %v621_v5 = vmov 0   ;;  %v550_v6 = vld [vmem:[%s243_s12 + $0x10] sm:$0xf]  ;;  %v568_v7 = vld [vmem:[%s243_s12 + $0x14] sm:$0xf0] }
  0x1e   : > { %595 = vset.pattern.permute.xlu0 %v621_v5  ;;  %596 = vset.pattern.permute.xlu1 %v621_v5  ;;  %v567_v8 = vld [vmem:[%s243_s12 + $0x14] sm:$0xf]  ;;  %v551_v9 = vor.u32 %v568_v7, %v550_v6  ;;  %v552_v10 = vld [vmem:[%s243_s12 + $0x18] sm:$0xf0]  ;;  %v542_v11 = vld [vmem:[%s243_s12] sm:$0xf] }
  0x1f   : > { %293 = vperm.xlu0 %595, %v281_v4   ;;  %v566_v12 = vld [vmem:[%s243_s12 + $0x4] sm:$0xf0]  ;;  %v555_v13 = vor.u32 %v567_v8, %v552_v10  ;;  %v565_v14 = vld [vmem:[%s243_s12 + $0x4] sm:$0xf]  ;;  %v544_v15 = vld [vmem:[%s243_s12 + $0x8] sm:$0xf0] }
  0x20   : > { %331 = vmatpush.bf16.msra.mxu0 %v551_v9  ;;  %v543_v16 = vor.u32 %v566_v12, %v542_v11  ;;  %v547_v17 = vor.u32 %v565_v14, %v544_v15  ;;  %v280_v18 = vld [vmem:[%s729_s4] sm:$0xff]  ;;  %vm321_vm0 = vcmask 261120   ;;  %v282_v20 = vld [vmem:[%s729_s4 + $0x10] sm:$0xff]  ;;  %v283_v21 = vld [vmem:[%s729_s4 + $0x18] sm:$0xff]  ;;  %vm364_vm1 = vcmask 130048   ;;  %s735_s30 = smov (!%p270_p8, %s534_s30), 3 }
  0x21   : > { %345 = vmatpush.bf16.msra.mxu1 %v555_v13  ;;  %v569_v19 = vld [vmem:[%s726_s1] sm:$0xff]  ;;  %361 = vperm.xlu1 %596, %v282_v20   ;;  %vm417_vm2 = vcmask 64512   ;;  %s535_s6 = sshll.u32 %s735_s30, 3 }
  0x22   : > { %v357_v30 = vld [vmem:[%s727_s2] sm:$0xf]  ;;  %s273_s9 = scalar_lea.vmem %s730_s5, %s535_s6 }
  0x23   : > { %v358_v35 = vunpack.c.l.bf16 %v357_v30  ;;  %v410_v38 = vld [vmem:[%s728_s3] sm:$0xf] }
  0x24   : > { %332 = vmatpush.bf16.msra.mxu0 %v543_v16  ;;  %v411_v44 = vunpack.c.l.bf16 %v410_v38 }
  0x25   : > { %346 = vmatpush.bf16.msra.mxu1 %v547_v17 }
  0x27   : > { %288 = vperm.xlu0 %595, %v280_v18   ;;  %556 = vmatmul.msk.bf16.vlgmr.msra.gmra.mxu0 %vm321_vm0, %v569_v19 }
  0x28   : > { %557 = vmatmul.msk.bf16.vlgmr.msra.gmra.mxu1 %vm321_vm0, %v569_v19 }
  0x29   : > { %414 = vperm.xlu1 %596, %v283_v21  }
  0x91   : > { %v294_v22 = vpop.permute.xlu0 %293 }
  0x93   : > { %v362_v39 = vpop.permute.xlu1 %361 }
  0x99   : > { %v289_v25 = vpop.permute.xlu0 %288 }
  0x9b   : > { %v415_v47 = vpop.permute.xlu1 %414 }
  0xa4   : > { %v334_v23 = vpop.f32.mrf.mxu0 }
  0xa5   : > { %v348_v24 = vpop.f32.mrf.mxu1  ;;  %v335_v27 = vadd.f32 %v334_v23, %v289_v25 }
  0xa6   : > { %v349_v31 = vadd.f32 %v348_v24, %v289_v25 }
  0xa7   : > { %v353_v36 = vmax.f32 %v335_v27, 0.0 }
  0xa8   : > { %v354_v37 = vmax.f32 %v349_v31, 0.0 }
  0xac   : > { %v336_v26 = vpop.f32.mrf.mxu0 }
  0xad   : > { %v350_v28 = vpop.f32.mrf.mxu1  ;;  %v337_v29 = vadd.f32 %v336_v26, %v294_v22 }
  0xae   : > { %v351_v32 = vadd.f32 %v350_v28, %v294_v22 }
  0xaf   : > { %v355_v33 = vmax.f32 %v337_v29, 0.0 }
  0xb0   : > { %v356_v34 = vmax.f32 %v351_v32, 0.0 }
  0xb1   : > { %382 = vmatpush.msra.mxu2 %v355_v33 }
  0xb2   : > { %402 = vmatpush.msra.mxu3 %v356_v34 }
  0xb3   : > { %383 = vmatpush.msra.mxu2 %v353_v36 }
  0xb4   : > { %403 = vmatpush.msra.mxu3 %v354_v37  ;;  %558 = vmatmul.msk.f32.vlgmr.msra.gmra.mxu2 %vm364_vm1, %v358_v35 }
  0xb5   : > { %559 = vmatmul.msk.f32.vlgmr.msra.gmra.mxu3 %vm364_vm1, %v358_v35 }
 0x137   : > { %v385_v40 = vpop.f32.mrf.mxu2 }
 0x138   : > { %v386_v41 = vadd.f32 %v385_v40, %v362_v39  ;;  %v405_v42 = vpop.f32.mrf.mxu3 }
 0x139   : > { %v406_v43 = vadd.f32 %v405_v42, %v362_v39 }
 0x13a   : > { %v408_v45 = vmax.f32 %v386_v41, 0.0 }
 0x13b   : > { %v409_v46 = vmax.f32 %v406_v43, 0.0 }
 0x13c   : > { %436 = vmatpush.msrb.mxu2 %v408_v45 }
 0x13d   : > { %456 = vmatpush.msrb.mxu3 %v409_v46  ;;  %560 = vmatmul.msk.f32.vlgmr.msrb.gmra.mxu2 %vm417_vm2, %v411_v44 }
 0x13e   : > { %561 = vmatmul.msk.f32.vlgmr.msrb.gmra.mxu3 %vm417_vm2, %v411_v44 }
 0x1c0   : > { %v438_v48 = vpop.f32.mrf.mxu2 }
 0x1c1   : > { %v439_v49 = vadd.f32 %v438_v48, %v415_v47  ;;  %v458_v50 = vpop.f32.mrf.mxu3 }
 0x1c2   : > { %v459_v51 = vadd.f32 %v458_v50, %v415_v47 }
 0x1c3   : > { %461 = vst [vmem:[%s273_s9] sm:$0xff] %v439_v49 }
 0x1c4   : > { %462 = vst [vmem:[%s273_s9 + $0x8] sm:$0xff] %v459_v51 }
 0x1c5 PF: > { %p12_p9 = scmp.ge.s32.totalorder %s669_s22, 4   ;;  %s731_s18 = smov %s615_s19 }
 0x1c6   : > { %s732_s19 = smov %s678_s25  ;;  %s733_s20 = smov %s669_s22 }
 0x1c7   :  { %14 = sbr.rel (!%p12_p9) target bundleno = 2 (0x2), region = 113 }

</bundles_post_ra>
